<compile_context>
chip_gen: v5e
topology: v5e:2x2
jax: 0.10.0
libtpu: 0.0.40
codegen_flags: <defaults>
</compile_context>

<pallas_src>
import jax
import jax.numpy as jnp
from jax.experimental import pallas as pl
from jax.experimental.pallas import tpu as pltpu

_LANES = 128
_PALLAS_MIN_BYTES = 128 * 1024  # below this the op is dispatch-bound


def _clamp_kernel(a_ref, x_ref, vmax_ref, vmin_ref):
    # a_ref: (1,) scalar in SMEM; x_ref: (br, 128) in VMEM;
    # vmax_ref / vmin_ref: (br, 128) in VMEM (separate contiguous outputs).
    a = a_ref[0]
    x = x_ref[...]                       # single load shared by both results
    vmax_ref[...] = jnp.minimum(x, a)    # clamp_max
    vmin_ref[...] = jnp.maximum(x, a)    # clamp_min


def _round_up(x: int, m: int) -> int:
    return ((x + m - 1) // m) * m


def clamp_minmax(x: jax.Array, a_scalar: jax.Array, *, block_rows: int = 2048):
    """Returns (clamp_max(x, a), clamp_min(x, a))."""
    orig_shape = x.shape
    dtype = x.dtype
    n = x.size
    # TODO(synk): for sub-f32 input dtypes PyTorch would promote to f32 before
    # comparing; we compare in the input dtype (exact for the f32 path).
    a = a_scalar.astype(dtype)

    # --- small-size fallback: fused XLA elementwise pair ------------------
    if n * dtype.itemsize < _PALLAS_MIN_BYTES:
        return jnp.minimum(x, a), jnp.maximum(x, a)

    # --- lane-dense (rows, 128) view --------------------------------------
    rows = pl.cdiv(n, _LANES)

    # Row-tile selection:
    #  * rows > block_rows: use block_rows (multiple of 8, >= 2 grid steps).
    #  * rows <= block_rows: split into 2 steps so the grid can be sharded
    #    across v7x's two TensorCores and the DMA pipeline can overlap.
    if rows <= block_rows:
        br = _round_up(pl.cdiv(rows, 2), 8) if rows >= 64 else rows
    else:
        br = block_rows
    grid_steps = pl.cdiv(rows, br)
    rows_padded = grid_steps * br

    flat = x.reshape(-1)
    pad_elems = rows_padded * _LANES - n
    if pad_elems:
        flat = jnp.pad(flat, (0, pad_elems))
    x2 = flat.reshape(rows_padded, _LANES)

    a_smem = jnp.reshape(a, (1,))

    total = rows_padded * _LANES
    cost = pl.CostEstimate(
        flops=2 * total,
        transcendentals=0,
        bytes_accessed=3 * total * dtype.itemsize,  # 1 read + 2 writes
    )

    vmax2, vmin2 = pl.pallas_call(
        _clamp_kernel,
        out_shape=(
            jax.ShapeDtypeStruct((rows_padded, _LANES), dtype),
            jax.ShapeDtypeStruct((rows_padded, _LANES), dtype),
        ),
        grid=(grid_steps,),
        in_specs=[
            pl.BlockSpec(memory_space=pltpu.MemorySpace.SMEM),   # scalar a
            pl.BlockSpec((br, _LANES), lambda i: (i, 0)),        # input tile
        ],
        out_specs=(
            pl.BlockSpec((br, _LANES), lambda i: (i, 0)),        # clamp_max
            pl.BlockSpec((br, _LANES), lambda i: (i, 0)),        # clamp_min
        ),
        compiler_params=pltpu.CompilerParams(
            dimension_semantics=("parallel",)),
        cost_estimate=cost,
    )(a_smem, x2)

    # --- restore the original layout --------------------------------------
    if pad_elems:
        v1 = vmax2.reshape(-1)[:n].reshape(orig_shape)
        v2 = vmin2.reshape(-1)[:n].reshape(orig_shape)
    else:
        v1 = vmax2.reshape(orig_shape)
        v2 = vmin2.reshape(orig_shape)
    return v1, v2


class Model:
    def __init__(self, m0: float = 1.5):
        # deterministic parameter init (matches torch.nn.Parameter(m0))
        self.a = jnp.array(m0, dtype=jnp.float32)

    def __call__(self, x: jax.Array):
        return clamp_minmax(x, self.a)


if __name__ == "__main__":
    key = jax.random.PRNGKey(0)
    model = Model(m0=1.5)

    def check(x):
        v1, v2 = model(x)
        jax.block_until_ready((v1, v2))
        ref_v1 = jnp.minimum(x, jnp.float32(1.5))
        ref_v2 = jnp.maximum(x, jnp.float32(1.5))
        assert v1.shape == x.shape and v2.shape == x.shape
        assert jnp.allclose(v1, ref_v1), "clamp_max mismatch"
        assert jnp.allclose(v2, ref_v2), "clamp_min mismatch"

    k0, k1, k2 = jax.random.split(key, 3)

    # 1) nominal module input (1, 1, 64, 64): dispatch-bound -> XLA fallback.
    check(jax.random.normal(k0, (1, 1, 64, 64), dtype=jnp.float32))

    # 2) larger input: exercises the Pallas kernel, clean shape (no padding,
    #    2-step grid, lane-dense tiles).
    check(jax.random.normal(k1, (2, 4, 64, 128), dtype=jnp.float32))

    # 3) ragged input: exercises the Pallas kernel's lane-remainder / row-pad
    #    path (n % 128 != 0).
    check(jax.random.normal(k2, (1, 1, 300, 130), dtype=jnp.float32))

    print("KERNEL_OK")
</pallas_src>

<mosaic_0001>
module attributes {stable_mosaic.version = 11 : i64} {
  func.func @_clamp_kernel(%arg0: i32, %arg1: memref<1xf32, #tpu.memory_space<smem>>, %arg2: memref<256x128xf32, #tpu.memory_space<vmem>>, %arg3: memref<256x128xf32, #tpu.memory_space<vmem>>, %arg4: memref<256x128xf32, #tpu.memory_space<vmem>>) attributes {dimension_semantics = [#tpu.dimension_semantics<parallel>], iteration_bounds = array<i64: 2>, scalar_prefetch = 0 : i64, scratch_operands = 0 : i64, tpu.core_type = #tpu.core_type<tc>, window_params = [{transform_indices = @transform_0, window_bounds = array<i64: 1>}, {transform_indices = @transform_1, window_bounds = array<i64: 256, 128>}, {transform_indices = @transform_2, window_bounds = array<i64: 256, 128>}, {transform_indices = @transform_3, window_bounds = array<i64: 256, 128>}]} {
    %c0 = arith.constant 0 : index
    %0 = memref.load %arg1[%c0] : memref<1xf32, #tpu.memory_space<smem>>
    %c0_0 = arith.constant 0 : index
    %c0_1 = arith.constant 0 : index
    %1 = vector.load %arg2[%c0_0, %c0_1] : memref<256x128xf32, #tpu.memory_space<vmem>>, vector<256x128xf32>
    %2 = vector.broadcast %0 : f32 to vector<256x128xf32>
    %3 = arith.minimumf %1, %2 : vector<256x128xf32>
    %c0_2 = arith.constant 0 : index
    %c0_3 = arith.constant 0 : index
    %4 = vector.load %arg3[%c0_2, %c0_3] : memref<256x128xf32, #tpu.memory_space<vmem>>, vector<256x128xf32>
    tpu.vector_store %arg3[%c0_2, %c0_3], %3 {strides = array<i32>} : memref<256x128xf32, #tpu.memory_space<vmem>>, vector<256x128xf32>,
    %5 = vector.broadcast %0 : f32 to vector<256x128xf32>
    %6 = arith.maximumf %1, %5 : vector<256x128xf32>
    %c0_4 = arith.constant 0 : index
    %c0_5 = arith.constant 0 : index
    %7 = vector.load %arg4[%c0_4, %c0_5] : memref<256x128xf32, #tpu.memory_space<vmem>>, vector<256x128xf32>
    tpu.vector_store %arg4[%c0_4, %c0_5], %6 {strides = array<i32>} : memref<256x128xf32, #tpu.memory_space<vmem>>, vector<256x128xf32>,
    return
  }
  func.func @transform_0(%arg0: i32) -> i32 {
    %c0_i32 = arith.constant 0 : i32
    %c0_i32_0 = arith.constant 0 : i32
    return %c0_i32 : i32
  }
  func.func @transform_1(%arg0: i32) -> (i32, i32) {
    %c0_i32 = arith.constant 0 : i32
    %c0_i32_0 = arith.constant 0 : i32
    return %arg0, %c0_i32 : i32, i32
  }
  func.func @transform_2(%arg0: i32) -> (i32, i32) {
    %c0_i32 = arith.constant 0 : i32
    %c0_i32_0 = arith.constant 0 : i32
    return %arg0, %c0_i32 : i32, i32
  }
  func.func @transform_3(%arg0: i32) -> (i32, i32) {
    %c0_i32 = arith.constant 0 : i32
    %c0_i32_0 = arith.constant 0 : i32
    return %arg0, %c0_i32 : i32, i32
  }
}

</mosaic_0001>

<bundles_post_ra>
// kernel: tpu_custom_call.1
= control target key start
LH: loop header
LB: loop body
LE: loop exit
PB: predicated region body
PF: predicated region fallthrough
CT: control target
= control target key end

     0   :  { %s1199_s0 = inlined_call_operand.<no memory space> [shape: f32[1], index: 0, kind: input, shape index: {}]   ;;  %s1200_s1 = inlined_call_operand.hbm [shape: f32[512,128], index: 1, kind: input, shape index: {}]   ;;  %s1201_s2 = inlined_call_operand.hbm [shape: f32[512,128], index: 2, kind: output, shape index: {0}]   ;;  %s1202_s3 = inlined_call_operand.hbm [shape: f32[512,128], index: 3, kind: output, shape index: {1}]  }
   0x1   :  { %9 = sst [smem:[#allocation2]] %s1199_s0 }
   0x2   :  { %10 = vsyncpa [#allocation4], 0 }
   0x3   :  { %12 = vsyncpa [#allocation4 + $0x1], 0 }
   0x4   :  { %13 = vsyncpa [#allocation5], 0 }
   0x5   :  { %15 = vsyncpa [#allocation5 + $0x1], 0 }
   0x6   :  { %16 = vsyncpa [#allocation8], 0 }
   0x7   :  { %18 = vsyncpa [#allocation8 + $0x1], 0  ;;  %s745_s14 = smov 0   ;;  %s747_s15 = smov 0  }
   0x8   :  { %s749_s16 = smov 0   ;;  %s751_s17 = smov 0  }
   0x9 LB: > { %s766_s0 = sadd.s32 4294967295, %s716_s17   ;;  %s512_s18 = sadd.s32 4294967294, %s716_s17   ;;  %s716_s17 = sphi %s751_s17, %s1212_s17   ;;  %s712_s16 = sphi %s749_s16, %s1211_s16   ;;  %s708_s15 = sphi %s747_s15, %s1210_s15   ;;  %s704_s14 = sphi %s745_s14, %s1209_s14  }
   0xa   : > { %s770_s19 = sadd.s32 1, %s716_s17   ;;  %s52_s20 = sadd.s32 1, %s712_s16 }
   0xb   : > { %s49_s21 = ssub.s32 %s716_s17, %s770_s19  ;;  %p59_p0 = scmp.ne.s32.totalorder %s712_s16, %s708_s15 }
   0xc   : > { %p50_p1 = scmp.eq.s32.totalorder %s49_s21, 0  ;;  %p60_p2 = scmp.eq.s32.totalorder %s716_s17, 0 }
   0xd   : > { %p65_p3 = scmp.ne.s32.totalorder %s708_s15, %s704_s14  ;;  %p66_p4 = scmp.eq.s32.totalorder %s766_s0, 0 }
   0xe   : > { %s782_s22 = scalar_select %p50_p1, %s712_s16, %s52_s20  }
   0xf   : > { %p784_p5 = por %p60_p2, %p59_p0  ;;  %p788_p6 = por %p66_p4, %p65_p3 }
  0x10   : > { %p89_p7 = scmp.eq.s32.totalorder %s766_s0, 1  ;;  %p95_p8 = scmp.eq.s32.totalorder %s512_s18, 1 }
  0x11   : > { %p550_p10 = scmp.lt.s32.totalorder %s716_s17, 2  ;;  %s144_s27 = sand.u32 1, %s712_s16  }
  0x12   : > { %p795_p11 = por %p89_p7, %p59_p0  ;;  %p799_p12 = por %p95_p8, %p65_p3 }
  0x13   : > { %s530_s28 = sshll.u32 %s716_s17, 8  ;;  %s515_s29 = sshll.u32 %s144_s27, 8 }
  0x14   : > { %s153_s5 = scalar_lea.hbm %s1200_s1, %s530_s28  ;;  %s148_s7 = scalar_lea.vmem [#allocation3], %s515_s29 }
  0x15   : > { %s154_s6 = sshll.u32 %s153_s5, 4  ;;  %s156_s8 = sshll.u32 %s148_s7, 4  ;;  %s155_s6 = int_to_ptr.hbm [resolvable:$true] %s154_s6  ;;  %s157_s8 = int_to_ptr.vmem [resolvable:$true] %s156_s8 }
  0x16   : > { %p810_p13 = pnand %p550_p10, %p784_p5  ;;  %p518_p0 = scmp.ge.s32.totalorder %s716_s17, 1 }
  0x17   : > { %p164_p1 = scmp.lt.s32.totalorder %s716_s17, 3  ;;  %s145_s10 = scalar_lea.sflag [#allocation4], %s144_s27 }
  0x18   : > { %s588_s11 = sshra.s32 %s155_s6, 4  ;;  %p592_p3 = pneg %p810_p13  ;;  %s589_s11 = int_to_ptr.hbm [resolvable:$true] %s588_s11 }
  0x19   : > { %s590_s12 = scalar_lea.hbm %s589_s11, 256  ;;  %s595_s20 = scalar_lea.hbm %s1200_s1, 512 }
  0x1a   : > { %p591_p2 = scmp.ne.s32.totalorder %s589_s11, %s590_s12  ;;  %p596_p5 = scmp.lt.s32.totalorder %s589_s11, %s1200_s1 }
  0x1b   : > { %p597_p8 = scmp.lt.s32.totalorder %s595_s20, %s590_s12 }
  0x1c   : > { %p593_p4 = pnand %p592_p3, %p591_p2 }
  0x1d   : > { %p598_p10 = por %p597_p8, %p596_p5 }
  0x1e   : > { %p594_p7 = pneg %p593_p4 }
  0x20   : > { %p599_p9 = pnand %p598_p10, %p594_p7 }
  0x22   : > { %602 = shalt.err (!%p599_p9)
}
  0x23   : > { %s718_s27 = smov 128   ;;  %s719_s28 = smov 8  }
  0x24   : > { %542 = dma.hbm_to_vmem [thread:$0]  (!%p810_p13), %s155_s6, 4096, %s157_s8, %s145_s10, %s718_s27, %s718_s27, %s719_s28  }
  0x25   : > { %p165_p2 = pnand %p518_p0, %p164_p1 }
  0x26   : > { %s831_s29 = sand.u32 (!%p165_p2), 1, %s708_s15  }
  0x27   : > { %168 = sbr.rel (%p165_p2) target bundleno = 133 (0x85), region = 28  ;;  %s834_s30 = sshll.u32 (!%p165_p2), %s831_s29, 8 }
  0x28   : > { %s171_s4 = scalar_lea.sflag (!%p165_p2), [#allocation4], %s831_s29  ;;  %s838_s5 = scalar_lea.vmem (!%p165_p2), [#allocation3], %s834_s30 }
  0x2c   : > { %691 = dma.done.wait (%p788_p6), %s171_s4, 4096  }
  0x2d   : > { %693 = vsyncadd (%p788_p6), %s171_s4, 4294963200  ;;  %s206_s6 = sld [smem:[#allocation2]]  ;;  %v845_v0 = vld [vmem:[%s838_s5] sm:$0xff]  ;;  %v850_v2 = vld [vmem:[%s838_s5 + $0x8] sm:$0xff]  ;;  %s876_s24 = scalar_lea.vmem [#allocation6], %s834_s30 }
  0x2e   : > { %v853_v3 = vld [vmem:[%s838_s5 + $0x10] sm:$0xff]  ;;  %v862_v7 = vld [vmem:[%s838_s5 + $0x18] sm:$0xff]  ;;  %v865_v8 = vld [vmem:[%s838_s5 + $0x20] sm:$0xff]  ;;  %s1050_s7 = scalar_lea.vmem [#allocation7], %s834_s30  ;;  %s531_s8 = sshll.u32 %s766_s0, 8 }
  0x2f   : > { %v868_v9 = vld [vmem:[%s838_s5 + $0x28] sm:$0xff]  ;;  %v873_v11 = vld [vmem:[%s838_s5 + $0x30] sm:$0xff]  ;;  %v882_v13 = vld [vmem:[%s838_s5 + $0x38] sm:$0xff]  ;;  %s385_s11 = scalar_lea.hbm %s1201_s2, %s531_s8  ;;  %s386_s0 = sshll.u32 %s876_s24, 4  ;;  %s1141_s0 = int_to_ptr.vmem [resolvable:$true] %s386_s0 }
  0x30   : > { %v888_v15 = vld [vmem:[%s838_s5 + $0x40] sm:$0xff]  ;;  %v894_v17 = vld [vmem:[%s838_s5 + $0x48] sm:$0xff]  ;;  %v900_v19 = vld [vmem:[%s838_s5 + $0x50] sm:$0xff]  ;;  %s402_s18 = scalar_lea.hbm %s1202_s3, %s531_s8  ;;  %s388_s20 = sshll.u32 %s385_s11, 4  ;;  %s389_s20 = int_to_ptr.hbm [resolvable:$true] %s388_s20 }
  0x31   : > { %v906_v21 = vld [vmem:[%s838_s5 + $0x58] sm:$0xff]  ;;  %v912_v23 = vld [vmem:[%s838_s5 + $0x60] sm:$0xff]  ;;  %v918_v25 = vld [vmem:[%s838_s5 + $0x68] sm:$0xff]  ;;  %s403_s21 = sshll.u32 %s1050_s7, 4  ;;  %s405_s23 = sshll.u32 %s402_s18, 4  ;;  %s1150_s21 = int_to_ptr.vmem [resolvable:$true] %s403_s21  ;;  %s1152_s23 = int_to_ptr.hbm [resolvable:$true] %s405_s23 }
  0x32   : > { %v924_v27 = vld [vmem:[%s838_s5 + $0x70] sm:$0xff]  ;;  %v930_v29 = vld [vmem:[%s838_s5 + $0x78] sm:$0xff]  ;;  %v936_v31 = vld [vmem:[%s838_s5 + $0x80] sm:$0xff]  ;;  %s369_s27 = scalar_lea.sflag [#allocation5], %s831_s29  ;;  %s632_s28 = sshra.s32 %s389_s20, 4  ;;  %s633_s28 = int_to_ptr.hbm [resolvable:$true] %s632_s28 }
  0x33   : > { %v847_v1 = vstv %s206_s6  ;;  %v942_v33 = vld [vmem:[%s838_s5 + $0x88] sm:$0xff]  ;;  %v948_v35 = vld [vmem:[%s838_s5 + $0x90] sm:$0xff]  ;;  %v954_v37 = vld [vmem:[%s838_s5 + $0x98] sm:$0xff]  ;;  %s634_s30 = scalar_lea.hbm %s633_s28, 256  ;;  %s638_s6 = scalar_lea.hbm %s1201_s2, 512 }
  0x34   : > { %v240_v4 = vmin.f32 %v845_v0, %v847_v1  ;;  %v241_v5 = vmin.f32 %v850_v2, %v847_v1  ;;  %v242_v6 = vmin.f32 %v853_v3, %v847_v1  ;;  %v243_v10 = vmin.f32 %v862_v7, %v847_v1  ;;  %v960_v39 = vld [vmem:[%s838_s5 + $0xa0] sm:$0xff]  ;;  %v966_v41 = vld [vmem:[%s838_s5 + $0xa8] sm:$0xff]  ;;  %v972_v43 = vld [vmem:[%s838_s5 + $0xb0] sm:$0xff]  ;;  %p635_p6 = scmp.ne.s32.totalorder %s633_s28, %s634_s30  ;;  %p639_p0 = scmp.lt.s32.totalorder %s633_s28, %s1201_s2 }
  0x35   : > { %v244_v12 = vmin.f32 %v865_v8, %v847_v1  ;;  %v245_v14 = vmin.f32 %v868_v9, %v847_v1  ;;  %v246_v16 = vmin.f32 %v873_v11, %v847_v1  ;;  %v247_v18 = vmin.f32 %v882_v13, %v847_v1  ;;  %v978_v45 = vld [vmem:[%s838_s5 + $0xb8] sm:$0xff]  ;;  %v984_v47 = vld [vmem:[%s838_s5 + $0xc0] sm:$0xff]  ;;  %v990_v49 = vld [vmem:[%s838_s5 + $0xc8] sm:$0xff]  ;;  %p640_p1 = scmp.lt.s32.totalorder %s638_s6, %s634_s30 }
  0x36   : > { %272 = vst [vmem:[%s876_s24] sm:$0xff] %v240_v4  ;;  %v248_v20 = vmin.f32 %v888_v15, %v847_v1  ;;  %v249_v22 = vmin.f32 %v894_v17, %v847_v1  ;;  %v250_v24 = vmin.f32 %v900_v19, %v847_v1  ;;  %v251_v26 = vmin.f32 %v906_v21, %v847_v1  ;;  %v996_v51 = vld [vmem:[%s838_s5 + $0xd0] sm:$0xff]  ;;  %v1002_v53 = vld [vmem:[%s838_s5 + $0xd8] sm:$0xff]  ;;  %v1008_v55 = vld [vmem:[%s838_s5 + $0xe0] sm:$0xff]  ;;  %p636_p9 = pnand %p635_p6, %p795_p11 }
  0x37   : > { %273 = vst [vmem:[%s876_s24 + $0x8] sm:$0xff] %v241_v5  ;;  %v252_v28 = vmin.f32 %v912_v23, %v847_v1  ;;  %v253_v30 = vmin.f32 %v918_v25, %v847_v1  ;;  %v254_v32 = vmin.f32 %v924_v27, %v847_v1  ;;  %v255_v34 = vmin.f32 %v930_v29, %v847_v1  ;;  %v1014_v57 = vld [vmem:[%s838_s5 + $0xe8] sm:$0xff]  ;;  %v1020_v59 = vld [vmem:[%s838_s5 + $0xf0] sm:$0xff]  ;;  %v1026_v61 = vld [vmem:[%s838_s5 + $0xf8] sm:$0xff]  ;;  %p641_p3 = por %p640_p1, %p639_p0 }
  0x38   : > { %274 = vst [vmem:[%s876_s24 + $0x10] sm:$0xff] %v242_v6  ;;  %v256_v36 = vmin.f32 %v936_v31, %v847_v1  ;;  %v257_v38 = vmin.f32 %v942_v33, %v847_v1  ;;  %v258_v40 = vmin.f32 %v948_v35, %v847_v1  ;;  %v259_v42 = vmin.f32 %v954_v37, %v847_v1  ;;  %p637_p13 = pneg %p636_p9 }
  0x39   : > { %275 = vst [vmem:[%s876_s24 + $0x18] sm:$0xff] %v243_v10  ;;  %v260_v44 = vmin.f32 %v960_v39, %v847_v1  ;;  %v261_v46 = vmin.f32 %v966_v41, %v847_v1  ;;  %v262_v48 = vmin.f32 %v972_v43, %v847_v1  ;;  %v263_v50 = vmin.f32 %v978_v45, %v847_v1 }
  0x3a   : > { %276 = vst [vmem:[%s876_s24 + $0x20] sm:$0xff] %v244_v12  ;;  %v264_v52 = vmin.f32 %v984_v47, %v847_v1  ;;  %v265_v54 = vmin.f32 %v990_v49, %v847_v1  ;;  %v266_v56 = vmin.f32 %v996_v51, %v847_v1  ;;  %v267_v58 = vmin.f32 %v1002_v53, %v847_v1  ;;  %p642_p4 = pnand %p641_p3, %p637_p13 }
  0x3b   : > { %277 = vst [vmem:[%s876_s24 + $0x28] sm:$0xff] %v245_v14  ;;  %v268_v60 = vmin.f32 %v1008_v55, %v847_v1  ;;  %v269_v62 = vmin.f32 %v1014_v57, %v847_v1  ;;  %v270_v63 = vmin.f32 %v1020_v59, %v847_v1  ;;  %v271_v4 = vmin.f32 %v1026_v61, %v847_v1 }
  0x3c   : > { %278 = vst [vmem:[%s876_s24 + $0x30] sm:$0xff] %v246_v16  ;;  %v304_v5 = vmax.f32 %v845_v0, %v847_v1  ;;  %v305_v6 = vmax.f32 %v850_v2, %v847_v1  ;;  %v306_v10 = vmax.f32 %v853_v3, %v847_v1  ;;  %v307_v12 = vmax.f32 %v862_v7, %v847_v1 }
  0x3d   : > { %279 = vst [vmem:[%s876_s24 + $0x38] sm:$0xff] %v247_v18  ;;  %v308_v0 = vmax.f32 %v865_v8, %v847_v1  ;;  %v309_v2 = vmax.f32 %v868_v9, %v847_v1  ;;  %v310_v3 = vmax.f32 %v873_v11, %v847_v1  ;;  %v311_v7 = vmax.f32 %v882_v13, %v847_v1 }
  0x3e   : > { %280 = vst [vmem:[%s876_s24 + $0x40] sm:$0xff] %v248_v20  ;;  %v312_v8 = vmax.f32 %v888_v15, %v847_v1  ;;  %v313_v9 = vmax.f32 %v894_v17, %v847_v1  ;;  %v314_v11 = vmax.f32 %v900_v19, %v847_v1  ;;  %v315_v13 = vmax.f32 %v906_v21, %v847_v1 }
  0x3f   : > { %281 = vst [vmem:[%s876_s24 + $0x48] sm:$0xff] %v249_v22  ;;  %v316_v14 = vmax.f32 %v912_v23, %v847_v1  ;;  %v317_v15 = vmax.f32 %v918_v25, %v847_v1  ;;  %v318_v16 = vmax.f32 %v924_v27, %v847_v1  ;;  %v319_v17 = vmax.f32 %v930_v29, %v847_v1 }
  0x40   : > { %282 = vst [vmem:[%s876_s24 + $0x50] sm:$0xff] %v250_v24  ;;  %v320_v18 = vmax.f32 %v936_v31, %v847_v1  ;;  %v321_v19 = vmax.f32 %v942_v33, %v847_v1  ;;  %v322_v20 = vmax.f32 %v948_v35, %v847_v1  ;;  %v323_v21 = vmax.f32 %v954_v37, %v847_v1 }
  0x41   : > { %283 = vst [vmem:[%s876_s24 + $0x58] sm:$0xff] %v251_v26  ;;  %v324_v22 = vmax.f32 %v960_v39, %v847_v1  ;;  %v325_v23 = vmax.f32 %v966_v41, %v847_v1  ;;  %v326_v24 = vmax.f32 %v972_v43, %v847_v1  ;;  %v327_v25 = vmax.f32 %v978_v45, %v847_v1 }
  0x42   : > { %284 = vst [vmem:[%s876_s24 + $0x60] sm:$0xff] %v252_v28  ;;  %v328_v26 = vmax.f32 %v984_v47, %v847_v1  ;;  %v329_v27 = vmax.f32 %v990_v49, %v847_v1  ;;  %v330_v28 = vmax.f32 %v996_v51, %v847_v1  ;;  %v331_v29 = vmax.f32 %v1002_v53, %v847_v1 }
  0x43   : > { %285 = vst [vmem:[%s876_s24 + $0x68] sm:$0xff] %v253_v30  ;;  %v332_v30 = vmax.f32 %v1008_v55, %v847_v1  ;;  %v333_v31 = vmax.f32 %v1014_v57, %v847_v1  ;;  %v335_v33 = vmax.f32 %v1026_v61, %v847_v1 }
  0x44   : > { %286 = vst [vmem:[%s876_s24 + $0x70] sm:$0xff] %v254_v32  ;;  %v334_v32 = vmax.f32 %v1020_v59, %v847_v1 }
  0x45   : > { %287 = vst [vmem:[%s876_s24 + $0x78] sm:$0xff] %v255_v34 }
  0x46   : > { %288 = vst [vmem:[%s876_s24 + $0x80] sm:$0xff] %v256_v36 }
  0x47   : > { %289 = vst [vmem:[%s876_s24 + $0x88] sm:$0xff] %v257_v38 }
  0x48   : > { %290 = vst [vmem:[%s876_s24 + $0x90] sm:$0xff] %v258_v40 }
  0x49   : > { %291 = vst [vmem:[%s876_s24 + $0x98] sm:$0xff] %v259_v42 }
  0x4a   : > { %292 = vst [vmem:[%s876_s24 + $0xa0] sm:$0xff] %v260_v44 }
  0x4b   : > { %293 = vst [vmem:[%s876_s24 + $0xa8] sm:$0xff] %v261_v46 }
  0x4c   : > { %294 = vst [vmem:[%s876_s24 + $0xb0] sm:$0xff] %v262_v48 }
  0x4d   : > { %295 = vst [vmem:[%s876_s24 + $0xb8] sm:$0xff] %v263_v50 }
  0x4e   : > { %296 = vst [vmem:[%s876_s24 + $0xc0] sm:$0xff] %v264_v52 }
  0x4f   : > { %297 = vst [vmem:[%s876_s24 + $0xc8] sm:$0xff] %v265_v54 }
  0x50   : > { %298 = vst [vmem:[%s876_s24 + $0xd0] sm:$0xff] %v266_v56 }
  0x51   : > { %299 = vst [vmem:[%s876_s24 + $0xd8] sm:$0xff] %v267_v58 }
  0x52   : > { %300 = vst [vmem:[%s876_s24 + $0xe0] sm:$0xff] %v268_v60 }
  0x53   : > { %301 = vst [vmem:[%s876_s24 + $0xe8] sm:$0xff] %v269_v62 }
  0x54   : > { %302 = vst [vmem:[%s876_s24 + $0xf0] sm:$0xff] %v270_v63 }
  0x55   : > { %303 = vst [vmem:[%s876_s24 + $0xf8] sm:$0xff] %v271_v4 }
  0x56   : > { %336 = vst [vmem:[%s1050_s7] sm:$0xff] %v304_v5 }
  0x57   : > { %337 = vst [vmem:[%s1050_s7 + $0x8] sm:$0xff] %v305_v6 }
  0x58   : > { %338 = vst [vmem:[%s1050_s7 + $0x10] sm:$0xff] %v306_v10 }
  0x59   : > { %339 = vst [vmem:[%s1050_s7 + $0x18] sm:$0xff] %v307_v12 }
  0x5a   : > { %340 = vst [vmem:[%s1050_s7 + $0x20] sm:$0xff] %v308_v0 }
  0x5b   : > { %341 = vst [vmem:[%s1050_s7 + $0x28] sm:$0xff] %v309_v2 }
  0x5c   : > { %342 = vst [vmem:[%s1050_s7 + $0x30] sm:$0xff] %v310_v3 }
  0x5d   : > { %343 = vst [vmem:[%s1050_s7 + $0x38] sm:$0xff] %v311_v7 }
  0x5e   : > { %344 = vst [vmem:[%s1050_s7 + $0x40] sm:$0xff] %v312_v8 }
  0x5f   : > { %345 = vst [vmem:[%s1050_s7 + $0x48] sm:$0xff] %v313_v9 }
  0x60   : > { %346 = vst [vmem:[%s1050_s7 + $0x50] sm:$0xff] %v314_v11 }
  0x61   : > { %347 = vst [vmem:[%s1050_s7 + $0x58] sm:$0xff] %v315_v13 }
  0x62   : > { %348 = vst [vmem:[%s1050_s7 + $0x60] sm:$0xff] %v316_v14 }
  0x63   : > { %349 = vst [vmem:[%s1050_s7 + $0x68] sm:$0xff] %v317_v15 }
  0x64   : > { %350 = vst [vmem:[%s1050_s7 + $0x70] sm:$0xff] %v318_v16 }
  0x65   : > { %351 = vst [vmem:[%s1050_s7 + $0x78] sm:$0xff] %v319_v17 }
  0x66   : > { %352 = vst [vmem:[%s1050_s7 + $0x80] sm:$0xff] %v320_v18 }
  0x67   : > { %353 = vst [vmem:[%s1050_s7 + $0x88] sm:$0xff] %v321_v19 }
  0x68   : > { %354 = vst [vmem:[%s1050_s7 + $0x90] sm:$0xff] %v322_v20 }
  0x69   : > { %355 = vst [vmem:[%s1050_s7 + $0x98] sm:$0xff] %v323_v21 }
  0x6a   : > { %356 = vst [vmem:[%s1050_s7 + $0xa0] sm:$0xff] %v324_v22 }
  0x6b   : > { %357 = vst [vmem:[%s1050_s7 + $0xa8] sm:$0xff] %v325_v23 }
  0x6c   : > { %358 = vst [vmem:[%s1050_s7 + $0xb0] sm:$0xff] %v326_v24 }
  0x6d   : > { %359 = vst [vmem:[%s1050_s7 + $0xb8] sm:$0xff] %v327_v25 }
  0x6e   : > { %360 = vst [vmem:[%s1050_s7 + $0xc0] sm:$0xff] %v328_v26 }
  0x6f   : > { %361 = vst [vmem:[%s1050_s7 + $0xc8] sm:$0xff] %v329_v27 }
  0x70   : > { %362 = vst [vmem:[%s1050_s7 + $0xd0] sm:$0xff] %v330_v28 }
  0x71   : > { %363 = vst [vmem:[%s1050_s7 + $0xd8] sm:$0xff] %v331_v29 }
  0x72   : > { %364 = vst [vmem:[%s1050_s7 + $0xe0] sm:$0xff] %v332_v30 }
  0x73   : > { %365 = vst [vmem:[%s1050_s7 + $0xe8] sm:$0xff] %v333_v31 }
  0x74   : > { %366 = vst [vmem:[%s1050_s7 + $0xf0] sm:$0xff] %v334_v32 }
  0x75   : > { %367 = vst [vmem:[%s1050_s7 + $0xf8] sm:$0xff] %v335_v33 }
  0x76   : > { %645 = shalt.err (!%p642_p4)
}
  0x77   : > { %s720_s7 = smov 128   ;;  %s721_s9 = smov 8  }
  0x78   : > { %535 = dma.vmem_to_hbm [thread:$0]  (%p795_p11), %s1141_s0, 4096, %s389_s20, %s369_s27, %s720_s7, %s720_s7, %s721_s9  }
  0x79   : > { %s374_s10 = scalar_lea.sflag [#allocation8], %s831_s29  ;;  %s660_s11 = sshra.s32 %s1152_s23, 4  ;;  %s661_s11 = int_to_ptr.hbm [resolvable:$true] %s660_s11 }
  0x7a   : > { %s662_s12 = scalar_lea.hbm %s661_s11, 256  ;;  %s666_s28 = scalar_lea.hbm %s1202_s3, 512 }
  0x7b   : > { %p663_p7 = scmp.ne.s32.totalorder %s661_s11, %s662_s12  ;;  %p667_p10 = scmp.lt.s32.totalorder %s661_s11, %s1202_s3 }
  0x7c   : > { %p668_p2 = scmp.lt.s32.totalorder %s666_s28, %s662_s12 }
  0x7d   : > { %p664_p5 = pnand %p663_p7, %p795_p11 }
  0x7e   : > { %p669_p6 = por %p668_p2, %p667_p10 }
  0x7f   : > { %p665_p8 = pneg %p664_p5 }
  0x81   : > { %p670_p9 = pnand %p669_p6, %p665_p8 }
  0x83   : > { %673 = shalt.err (!%p670_p9)
}
  0x84   : > { %536 = dma.vmem_to_hbm [thread:$0]  (%p795_p11), %s1150_s21, 4096, %s1152_s23, %s374_s10, %s720_s7, %s720_s7, %s721_s9  }
  0x85 PF: > { %s420_s29 = sand.u32 1, %s704_s14   ;;  %p1208_p13 = scmp.ge.s32.totalorder %s716_s17, 2 }
  0x86   : > { %s421_s0 = scalar_lea.sflag [#allocation5], %s420_s29 }
  0x87   : > { %p544_p0 = pnand %p1208_p13, %p799_p12 }
  0x89   : > { %p545_p1 = pneg %p544_p0 }
  0x8b   : > { %695 = dma.done.wait (%p545_p1), %s421_s0, 4096  }
  0x8c   : > { %697 = vsyncadd (%p545_p1), %s421_s0, 4294963200  ;;  %s431_s20 = scalar_lea.sflag [#allocation8], %s420_s29 }
  0x8d   : > { %699 = dma.done.wait (%p545_p1), %s431_s20, 4096  }
  0x8e   : > { %701 = vsyncadd (%p545_p1), %s431_s20, 4294963200  ;;  %p21_p11 = scmp.ge.s32.totalorder %s770_s19, 4   ;;  %s1209_s14 = smov %s708_s15 }
  0x8f   : > { %s1210_s15 = smov %s712_s16  ;;  %s1211_s16 = smov %s782_s22 }
  0x90   : > { %s1212_s17 = smov %s770_s19  ;;  %23 = sbr.rel (!%p21_p11) target bundleno = 9 (0x9), region = 90 }
  0x95   :  { %437 = vsyncpa [#allocation4], 1 }
  0x96   :  { %439 = vsyncpa [#allocation4 + $0x1], 1 }
  0x97   :  { %440 = vsyncpa [#allocation5], 1 }
  0x98   :  { %442 = vsyncpa [#allocation5 + $0x1], 1 }
  0x99   :  { %443 = vsyncpa [#allocation8], 1 }
  0x9a   :  { %445 = vsyncpa [#allocation8 + $0x1], 1 }

</bundles_post_ra>
